<compile_context>
chip_gen: v7x
topology: tpu7x:2x2x1
jax: 0.10.0
libtpu: 0.0.40
codegen_flags: <defaults>
</compile_context>

<pallas_src>
import jax
import jax.numpy as jnp
from jax.experimental import pallas as pl
from jax.experimental.pallas import tpu as pltpu


# ------------------------------ Pallas kernel ------------------------------ #

def _token_type_embed_kernel(ids_ref, table_ref, out_ref):
    """Embedding gather via an unrolled compare+select chain (VPU only).

    ids_ref   : (TM, 1) int32  token-type ids for this tile
    table_ref : (T,  D)        full token-type embedding table (VMEM-resident)
    out_ref   : (TM, D)        gathered embeddings for this tile
    """
    ids = ids_ref[...]                                              # (TM, 1) int32
    T = table_ref.shape[0]
    # Start from row 0 broadcast across the tile, then select higher rows.
    # T is the number of token types (2 for BERT), so this unrolled chain is
    # a couple of VPU cmp/select slots per vreg and hides under the output DMA.
    acc = jnp.broadcast_to(table_ref[pl.ds(0, 1), :], out_ref.shape)
    for t in range(1, T):
        row = table_ref[pl.ds(t, 1), :]                             # (1, D)
        acc = jnp.where(ids == t, row, acc)                         # (TM,1) vs (1,D) -> (TM,D)
    out_ref[...] = acc.astype(out_ref.dtype)


# ------------------------------ Python wrapper ----------------------------- #

def _round_up(x, m):
    return ((x + m - 1) // m) * m


def token_type_encoding(token_type_embeddings, seq_input, token_type_input=None,
                        tm_max=1024):
    """token_type_embeddings: (T, D); seq_input: (S, N) int; returns (S, N, D)."""
    S, N = seq_input.shape
    T, D = token_type_embeddings.shape

    if token_type_input is None:
        # zeroShape(): all token types are 0 -> the result is just row 0 broadcast.
        # No kernel launch, no zeros tensor, no extra HBM traffic.
        return jnp.broadcast_to(token_type_embeddings[0], (S, N, D))

    ids = token_type_input.reshape(-1).astype(jnp.int32)            # (M,)
    M = S * N

    # Tile over M; pad to a multiple of the tile (rows padded with id 0, sliced off).
    TM = min(tm_max, _round_up(M, 8))
    M_pad = _round_up(M, TM)
    if M_pad != M:
        ids = jnp.pad(ids, (0, M_pad - M))
    ids = ids.reshape(M_pad, 1)

    grid = (M_pad // TM,)

    out = pl.pallas_call(
        _token_type_embed_kernel,
        out_shape=jax.ShapeDtypeStruct((M_pad, D), token_type_embeddings.dtype),
        grid=grid,
        in_specs=[
            pl.BlockSpec((TM, 1), lambda i: (i, 0)),                # ids tile
            pl.BlockSpec((T, D), lambda i: (0, 0)),                 # full table, resident
        ],
        out_specs=pl.BlockSpec((TM, D), lambda i: (i, 0)),          # lane-dense output tile
        compiler_params=pltpu.CompilerParams(
            dimension_semantics=("parallel",),
        ),
    )(ids, token_type_embeddings)

    return out[:M].reshape(S, N, D)


# ----------------------------------- main ----------------------------------- #

if __name__ == "__main__":
    key = jax.random.PRNGKey(0)
    k_embed, k_src, k_type = jax.random.split(key, 3)

    TYPE_TOKEN_NUM = 2        # type_token_num
    D_MODEL = 128             # d_model (lane-dense, multiple of 128)
    SEQ, BATCH = 8, 2         # (S, N), nn.Transformer sequence-first layout

    token_type_embeddings = (
        0.02 * jax.random.normal(k_embed, (TYPE_TOKEN_NUM, D_MODEL))
    ).astype(jnp.float32)
    seq_input = jax.random.randint(k_src, (SEQ, BATCH), 0, 100, dtype=jnp.int32)
    token_type_input = jax.random.randint(
        k_type, (SEQ, BATCH), 0, TYPE_TOKEN_NUM, dtype=jnp.int32
    )

    # --- path 1: token_type_input provided (single-tile grid) ---
    fwd = jax.jit(token_type_encoding, static_argnames=("tm_max",))
    out = fwd(token_type_embeddings, seq_input, token_type_input)
    jax.block_until_ready(out)
    assert out.shape == (SEQ, BATCH, D_MODEL) and out.dtype == jnp.float32
    ref = token_type_embeddings[token_type_input]                   # plain-JAX reference gather
    assert jnp.allclose(out, ref, atol=1e-6), "mismatch vs reference embedding lookup"

    # --- path 1b: multi-tile grid + ragged-M padding path (small tiles to exercise it) ---
    seq_input_r = jax.random.randint(k_src, (5, 3), 0, 100, dtype=jnp.int32)
    token_type_r = jax.random.randint(k_type, (5, 3), 0, TYPE_TOKEN_NUM, dtype=jnp.int32)
    out_r = fwd(token_type_embeddings, seq_input_r, token_type_r, tm_max=8)
    jax.block_until_ready(out_r)
    ref_r = token_type_embeddings[token_type_r]
    assert jnp.allclose(out_r, ref_r, atol=1e-6), "mismatch on multi-tile / padded path"

    # --- path 2: token_type_input is None -> zeroShape() default (broadcast, no kernel) ---
    fwd_none = jax.jit(lambda tab, seq: token_type_encoding(tab, seq, None))
    out0 = fwd_none(token_type_embeddings, seq_input)
    jax.block_until_ready(out0)
    ref0 = jnp.broadcast_to(token_type_embeddings[0], (SEQ, BATCH, D_MODEL))
    assert jnp.allclose(out0, ref0, atol=1e-6), "mismatch on zeroShape (None) path"

    print("KERNEL_OK")
</pallas_src>

<mosaic_0001>
module attributes {stable_mosaic.version = 11 : i64} {
  func.func @_token_type_embed_kernel(%arg0: i32, %arg1: memref<16x1xi32, #tpu.memory_space<vmem>>, %arg2: memref<2x128xf32, #tpu.memory_space<vmem>>, %arg3: memref<16x128xf32, #tpu.memory_space<vmem>>) attributes {dimension_semantics = [#tpu.dimension_semantics<parallel>], iteration_bounds = array<i64: 1>, scalar_prefetch = 0 : i64, scratch_operands = 0 : i64, tpu.core_type = #tpu.core_type<tc>, window_params = [{transform_indices = @transform_0, window_bounds = array<i64: 16, 1>}, {pipeline_mode = #tpu.pipeline_mode<synchronous>, transform_indices = @transform_1, window_bounds = array<i64: 2, 128>}, {transform_indices = @transform_2, window_bounds = array<i64: 16, 128>}]} {
    %c0 = arith.constant 0 : index
    %c0_0 = arith.constant 0 : index
    %0 = vector.load %arg1[%c0, %c0_0] : memref<16x1xi32, #tpu.memory_space<vmem>>, vector<16x1xi32>
    %c0_1 = arith.constant 0 : index
    %c0_2 = arith.constant 0 : index
    %1 = vector.load %arg2[%c0_1, %c0_2] : memref<2x128xf32, #tpu.memory_space<vmem>>, vector<1x128xf32>
    %2 = vector.shape_cast %1 : vector<1x128xf32> to vector<1x128xf32>
    %3 = vector.broadcast %2 : vector<1x128xf32> to vector<16x128xf32>
    %c1 = arith.constant 1 : index
    %c0_3 = arith.constant 0 : index
    %4 = vector.load %arg2[%c1, %c0_3] : memref<2x128xf32, #tpu.memory_space<vmem>>, vector<1x128xf32>
    %c1_i32 = arith.constant 1 : i32
    %5 = vector.broadcast %c1_i32 : i32 to vector<16x1xi32>
    %6 = arith.cmpi eq, %0, %5 : vector<16x1xi32>
    %7 = vector.shape_cast %6 : vector<16x1xi1> to vector<16x1xi1>
    %8 = vector.broadcast %7 : vector<16x1xi1> to vector<16x128xi1>
    %9 = vector.shape_cast %4 : vector<1x128xf32> to vector<1x128xf32>
    %10 = vector.broadcast %9 : vector<1x128xf32> to vector<16x128xf32>
    %11 = arith.select %8, %10, %3 : vector<16x128xi1>, vector<16x128xf32>
    %c0_4 = arith.constant 0 : index
    %c0_5 = arith.constant 0 : index
    %12 = vector.load %arg3[%c0_4, %c0_5] : memref<16x128xf32, #tpu.memory_space<vmem>>, vector<16x128xf32>
    tpu.vector_store %arg3[%c0_4, %c0_5], %11 {strides = array<i32>} : memref<16x128xf32, #tpu.memory_space<vmem>>, vector<16x128xf32>,
    return
  }
  func.func @transform_0(%arg0: i32) -> (i32, i32) {
    %c0_i32 = arith.constant 0 : i32
    %c0_i32_0 = arith.constant 0 : i32
    return %arg0, %c0_i32 : i32, i32
  }
  func.func @transform_1(%arg0: i32) -> (i32, i32) {
    %c0_i32 = arith.constant 0 : i32
    %c0_i32_0 = arith.constant 0 : i32
    %c0_i32_1 = arith.constant 0 : i32
    return %c0_i32, %c0_i32_0 : i32, i32
  }
  func.func @transform_2(%arg0: i32) -> (i32, i32) {
    %c0_i32 = arith.constant 0 : i32
    %c0_i32_0 = arith.constant 0 : i32
    return %arg0, %c0_i32 : i32, i32
  }
}

</mosaic_0001>

<bundles_post_ra>
// kernel: token_type_encoding.1
= control target key start
LH: loop header
LB: loop body
LE: loop exit
PB: predicated region body
PF: predicated region fallthrough
CT: control target
= control target key end

     0   :  { %v87_v2 = vmov 0   ;;  %s130_s0 = inlined_call_operand.vmem [shape: s32[16,1], index: 0, kind: input, shape index: {}]   ;;  %s131_s1 = inlined_call_operand.vmem [shape: f32[2,128], index: 1, kind: input, shape index: {}]   ;;  %s132_s2 = inlined_call_operand.hbm [shape: f32[16,128], index: 2, kind: output, shape index: {}]  }
   0x1   :  { %v12_v0 = vld [vmem:[%s130_s0] sm:$0xff]  ;;  %v13_v1 = vld [vmem:[%s130_s0 + $0x8] sm:$0xff]  ;;  %62 = vset.pattern.permute.xlu0 %v87_v2 }
   0x2   :  { %vm20_vm0 = vcmp.eq.s32.totalorder %v12_v0, 1  ;;  %vm21_vm1 = vcmp.eq.s32.totalorder %v13_v1, 1 }
   0x3   :  { %7 = vsyncpa [#allocation3], 0  ;;  %v22_v3 = vsel %vm20_vm0, 1, %v87_v2  ;;  %v23_v4 = vsel %vm21_vm1, 1, %v87_v2  ;;  %v56_v5 = vld [vmem:[%s131_s1] ss:$0 sm:$0xff] }
   0x4   :  { %25 = vperm.xlu0 %62, %v22_v3   ;;  %v57_v6 = vld [vmem:[%s131_s1 + $0x1] ss:$0 sm:$0xff]  ;;  %s88_s0 = smov [#allocation2]  }
   0x5   :  { %s45_s17 = sshll.u32 %s88_s0, 4  ;;  %s46_s17 = int_to_ptr.vmem [resolvable:$true] %s45_s17 }
   0x6   :  { %s63_s18 = scalar_lea.vmem %s46_s17, 256  ;;  %p68_p1 = scmp.lt.s32.totalorder %s46_s17, %s46_s17 }
   0x7   :  { %p64_p0 = scmp.ne.s32.totalorder %s46_s17, %s63_s18  ;;  %p69_p2 = scmp.lt.s32.totalorder %s63_s18, %s63_s18 }
   0x8   :  { %28 = vperm.xlu0 %62, %v23_v4  }
   0x9   :  { %p70_p3 = por %p69_p2, %p68_p1 }
   0xb   :  { %p71_p4 = pnand %p70_p3, %p64_p0 }
  0x83   :  { %v26_v7 = vpop.permute.xlu0 %25 }
  0x84   :  { %vm30_vm2 = vcmp.eq.s32.totalorder %v26_v7, 1 }
  0x85   :  { %v36_v8 = vsel %vm30_vm2, %v57_v6, %v56_v5 }
  0x86   :  { %38 = vst [vmem:[#allocation2] sm:$0xff] %v36_v8 }
  0x87   :  { %v29_v9 = vpop.permute.xlu0 %28 }
  0x88   :  { %vm31_vm3 = vcmp.eq.s32.totalorder %v29_v9, 1 }
  0x89   :  { %v37_v10 = vsel %vm31_vm3, %v57_v6, %v56_v5 }
  0x8a   :  { %39 = vst [vmem:[#allocation2 + $0x8] sm:$0xff] %v37_v10 }
  0x8b   :  { %74 = shalt.err (!%p71_p4)
}
  0x8c   :  { %s75_s20 = scalar_lea.hbm %s132_s2, 256 }
  0x8d   :  { %p76_p5 = scmp.ne.s32.totalorder %s132_s2, %s75_s20  ;;  %p79_p6 = scmp.lt.u32.totalorder %s75_s20, %s132_s2 }
  0x8f   :  { %p81_p7 = pnand %p79_p6, %p76_p5 }
  0x91   :  { %84 = shalt.err (!%p81_p7)
}
  0x92   :  { %s89_s25 = smov 128   ;;  %s90_s26 = smov 8  }
  0x93   :  { %51 = dma.vmem_to_hbm [thread:$0]  %s46_s17, 256, %s132_s2, [#allocation3], %s89_s25, %s89_s25, %s90_s26  }
  0x94   :  { %85 = dma.done.wait [#allocation3], 256  }
  0x95   :  { %86 = vsyncadd [#allocation3], 4294967040 }
  0x96   :  { %55 = vsyncpa [#allocation3], 1 }

</bundles_post_ra>
